<compile_context>
chip_gen: v6e
topology: v6e:2x2x1
jax: 0.10.0
libtpu: 0.0.40
codegen_flags: <defaults>
</compile_context>

<pallas_src>
import functools
import math

import jax
import jax.numpy as jnp
from jax import lax
from jax.experimental import pallas as pl
from jax.experimental.pallas import tpu as pltpu


def _round_up(a, b):
    return ((a + b - 1) // b) * b


def _detect_num_tensorcores():
    # Best-effort TensorCore count (v5e/v6e: 1, v7x: 2).  Only used to decide whether
    # splitting the row grid buys parallelism; default to 1 (one maximal tile) if unknown.
    try:
        info = pltpu.get_tpu_info()
        for attr in ("num_cores", "core_count", "num_tensorcores", "tensorcore_count"):
            v = getattr(info, attr, None)
            if isinstance(v, int) and v > 0:
                return v
    except Exception:
        pass
    return 1


def _pick_pack(in_dim, d_model, rows):
    """Smallest pack with K=pack*in_dim and N=pack*d_model both multiples of 128 (lane-dense
    input AND output).  Falls back to pack=1 (still correct, just lane-sparse -> masked
    vst.msk stores) when rows is not divisible by pack or the dims are already wide."""
    for p in (1, 2, 4, 8, 16, 32):
        K, N = p * in_dim, p * d_model
        if K % 128 == 0 and N % 128 == 0 and K <= 1024 and N <= 1024:
            return p if rows % p == 0 else 1
    return 1


def _embed_kernel(x_ref, w_ref, s_ref, p_ref, o_ref, *, eps, approximate_gelu):
    """Fused Linear -> LayerNorm -> GELU on lane-packed rows.

    x_ref: (tm, K)   K = pack*in_dim   -- `pack` logical rows per super-row (lane-dense)
    w_ref: (K, N)    N = pack*d_model  -- block-diagonal copies of the Linear weight
    s_ref: (N, N)    segmented-mean operator: block-diag of ones(d_model)/d_model, so
                     y @ s broadcasts each group's mean back to its own d_model lanes
    p_ref: (3, N)    [bias; gamma; beta], each tiled `pack` times
    o_ref: (tm, N)
    """
    x = x_ref[...]                        # native dtype -> MXU (bf16 inputs go straight in)
    w = w_ref[...]
    s = s_ref[...]                        # f32
    prm = p_ref[...].astype(jnp.float32)

    # Linear (f32 accumulation on the MXU).
    y = jnp.dot(x, w, preferred_element_type=jnp.float32) + prm[0:1, :]

    # LayerNorm over each d_model-lane group.  Per-group mean/var are computed on the MXU via
    # the segmented-mean matrix (no cross-lane reshape / XLU relayout; everything stays
    # lane-dense).  Biased variance, f32 math: matches torch.nn.LayerNorm.
    mean = jnp.dot(y, s, preferred_element_type=jnp.float32)
    c = y - mean
    var = jnp.dot(c * c, s, preferred_element_type=jnp.float32)
    yn = c * lax.rsqrt(var + eps) * prm[1:2, :] + prm[2:3, :]

    if approximate_gelu:
        # tanh GELU (== torch GELU(approximate="tanh")): tanh runs on the EUP, off the VALU
        # critical path.  Opt-in only -- slight numerics change vs exact erf.
        out = 0.5 * yn * (1.0 + jnp.tanh(0.7978845608028654 * (yn + 0.044715 * yn * yn * yn)))
    else:
        # Exact erf GELU: PyTorch nn.GELU() default numerics.
        out = 0.5 * yn * (1.0 + lax.erf(yn * 0.7071067811865476))

    o_ref[...] = out.astype(o_ref.dtype)


def crypto_token_embedding(x, w_t, bias, gamma, beta, *, eps=1e-5, tm=16384,
                           approximate_gelu=False, out_dtype=None, num_tensorcores=None):
    """x: (..., patch_size*c_in) -> (..., d_model).  w_t is the Linear weight transposed."""
    in_dim, d_model = w_t.shape
    orig_shape = x.shape
    rows = math.prod(orig_shape[:-1])
    out_dtype = x.dtype if out_dtype is None else out_dtype
    if num_tensorcores is None:
        num_tensorcores = _detect_num_tensorcores()

    pack = _pick_pack(in_dim, d_model, rows)
    K, N = pack * in_dim, pack * d_model
    rows_s = rows // pack                                  # super-rows (pack logical rows each)

    # Lane-dense packing of the input: pure row-major reshape (no copy, no pad).
    xp = x.reshape(rows_s, K)

    # Tiny, VMEM-resident side inputs (constant index_map -> fetched once, reused):
    #   block-diagonal weight, segmented-mean operator, fused [bias; gamma; beta].
    w_bd = jnp.kron(jnp.eye(pack, dtype=w_t.dtype), w_t) if pack > 1 else w_t
    seg_mean = jnp.kron(jnp.eye(pack, dtype=jnp.float32),
                        jnp.full((d_model, d_model), 1.0 / d_model, dtype=jnp.float32))
    params = jnp.stack([jnp.tile(bias, pack), jnp.tile(gamma, pack), jnp.tile(beta, pack)])

    # --- Row-tile selection --------------------------------------------------------------
    in_bytes = jnp.dtype(x.dtype).itemsize
    out_bytes = jnp.dtype(out_dtype).itemsize
    const_bytes = 2 * (w_bd.size * w_bd.dtype.itemsize + seg_mean.size * 4
                       + params.size * params.dtype.itemsize)
    bytes_per_super_row = 2 * (K * in_bytes + N * out_bytes)   # double-buffered in + out
    vmem_budget = 40 * 1024 * 1024                             # safe on v5e/v6e and v7x (64 MiB)
    tm_s = max(8, tm // pack)
    tm_s = min(tm_s, max(8, (vmem_budget - const_bytes) // bytes_per_super_row))
    tm_s = _round_up(tm_s, 8)
    if num_tensorcores > 1:
        # >= 2 steps per core so BlockSpec double-buffering actually overlaps DMA with compute.
        target_steps = 2 * num_tensorcores
        if rows_s >= target_steps * 8:
            tm_s = min(tm_s, _round_up(-(-rows_s // target_steps), 8))
    if tm_s >= rows_s:
        tm_s = rows_s                       # single block covering the full (possibly ragged) dim

    grid = (pl.cdiv(rows_s, tm_s),)         # ragged last block: Pallas OOB block masking
    vmem_limit = int(min(max(tm_s * bytes_per_super_row + const_bytes + (4 << 20), 16 << 20),
                         48 << 20))

    out_p = pl.pallas_call(
        functools.partial(_embed_kernel, eps=eps, approximate_gelu=approximate_gelu),
        out_shape=jax.ShapeDtypeStruct((rows_s, N), out_dtype),
        grid_spec=pltpu.PrefetchScalarGridSpec(
            num_scalar_prefetch=0,
            grid=grid,
            in_specs=[
                pl.BlockSpec((tm_s, K), lambda i: (i, 0)),
                pl.BlockSpec((K, N), lambda i: (0, 0)),      # block-diag weight (VMEM-resident)
                pl.BlockSpec((N, N), lambda i: (0, 0)),      # segmented-mean operator
                pl.BlockSpec((3, N), lambda i: (0, 0)),      # fused bias/gamma/beta
            ],
            out_specs=pl.BlockSpec((tm_s, N), lambda i: (i, 0)),
        ),
        compiler_params=pltpu.CompilerParams(
            dimension_semantics=("parallel",),
            vmem_limit_bytes=vmem_limit,
        ),
    )(xp, w_bd, seg_mean, params)

    # Row-major unpack of the lane-packed output (free reshape), then restore leading dims.
    return out_p.reshape(*orig_shape[:-1], d_model)


def reference(x, w_t, b, gamma, beta, eps=1e-5, approximate_gelu=False):
    y = x @ w_t + b
    mean = jnp.mean(y, axis=-1, keepdims=True)
    var = jnp.mean((y - mean) ** 2, axis=-1, keepdims=True)
    yn = (y - mean) / jnp.sqrt(var + eps) * gamma + beta
    if approximate_gelu:
        return 0.5 * yn * (1.0 + jnp.tanh(0.7978845608028654 * (yn + 0.044715 * yn ** 3)))
    return 0.5 * yn * (1.0 + lax.erf(yn / jnp.sqrt(2.0)))


if __name__ == "__main__":
    # Module config: c_in=4, patch_size=4 -> in_dim=16, d_model=32
    c_in, patch_size, d_model = 4, 4, 32
    in_dim = patch_size * c_in
    batch, seq = 2, 8

    key = jax.random.PRNGKey(0)
    kx, kw, kb, kx2, kx3 = jax.random.split(key, 5)

    x = jax.random.normal(kx, (batch, seq, in_dim), dtype=jnp.float32)

    # Deterministic param init (Linear: uniform(-1/sqrt(in_dim), 1/sqrt(in_dim)))
    bound = 1.0 / jnp.sqrt(jnp.float32(in_dim))
    w = jax.random.uniform(kw, (d_model, in_dim), jnp.float32, -bound, bound)
    b = jax.random.uniform(kb, (d_model,), jnp.float32, -bound, bound)
    w_t = w.T
    gamma = jnp.ones((d_model,), jnp.float32)
    beta = jnp.zeros((d_model,), jnp.float32)

    # 1) Main check: packed lane-dense path (rows=16, pack=8, single block), exact-erf GELU.
    out = jax.block_until_ready(crypto_token_embedding(x, w_t, b, gamma, beta))
    assert out.shape == (batch, seq, d_model)
    assert jnp.allclose(out, reference(x, w_t, b, gamma, beta), atol=2e-5, rtol=2e-5), \
        "mismatch vs reference (packed path)"

    # 2) Ragged grid on the packed path (rows=88 -> 11 super-rows, tile=8 -> partial last block).
    x2 = jax.random.normal(kx2, (88, in_dim), dtype=jnp.float32)
    out2 = jax.block_until_ready(crypto_token_embedding(x2, w_t, b, gamma, beta, tm=64))
    assert jnp.allclose(out2, reference(x2, w_t, b, gamma, beta), atol=2e-5, rtol=2e-5), \
        "mismatch vs reference (ragged packed path)"

    # 3) Fallback path (rows=21 not divisible by pack -> pack=1) with ragged grid and
    #    opt-in tanh-approx GELU.
    x3 = jax.random.normal(kx3, (21, in_dim), dtype=jnp.float32)
    out3 = jax.block_until_ready(
        crypto_token_embedding(x3, w_t, b, gamma, beta, tm=8, approximate_gelu=True))
    assert jnp.allclose(out3, reference(x3, w_t, b, gamma, beta, approximate_gelu=True),
                        atol=1e-3, rtol=1e-3), "mismatch vs reference (fallback / tanh path)"

    print("KERNEL_OK")
</pallas_src>

<mosaic_0001>
module attributes {stable_mosaic.version = 11 : i64} {
  func.func @_embed_kernel(%arg0: i32, %arg1: memref<2x128xf32, #tpu.memory_space<vmem>>, %arg2: memref<128x256xf32, #tpu.memory_space<vmem>>, %arg3: memref<256x256xf32, #tpu.memory_space<vmem>>, %arg4: memref<3x256xf32, #tpu.memory_space<vmem>>, %arg5: memref<2x256xf32, #tpu.memory_space<vmem>>) attributes {dimension_semantics = [#tpu.dimension_semantics<parallel>], iteration_bounds = array<i64: 1>, scalar_prefetch = 0 : i64, scratch_operands = 0 : i64, tpu.core_type = #tpu.core_type<tc>, window_params = [{transform_indices = @transform_0, window_bounds = array<i64: 2, 128>}, {pipeline_mode = #tpu.pipeline_mode<synchronous>, transform_indices = @transform_1, window_bounds = array<i64: 128, 256>}, {pipeline_mode = #tpu.pipeline_mode<synchronous>, transform_indices = @transform_2, window_bounds = array<i64: 256, 256>}, {pipeline_mode = #tpu.pipeline_mode<synchronous>, transform_indices = @transform_3, window_bounds = array<i64: 3, 256>}, {transform_indices = @transform_4, window_bounds = array<i64: 2, 256>}]} {
    %c0 = arith.constant 0 : index
    %c0_0 = arith.constant 0 : index
    %0 = vector.load %arg1[%c0, %c0_0] : memref<2x128xf32, #tpu.memory_space<vmem>>, vector<2x128xf32>
    %c0_1 = arith.constant 0 : index
    %c0_2 = arith.constant 0 : index
    %1 = vector.load %arg2[%c0_1, %c0_2] : memref<128x256xf32, #tpu.memory_space<vmem>>, vector<128x256xf32>
    %c0_3 = arith.constant 0 : index
    %c0_4 = arith.constant 0 : index
    %2 = vector.load %arg3[%c0_3, %c0_4] : memref<256x256xf32, #tpu.memory_space<vmem>>, vector<256x256xf32>
    %c0_5 = arith.constant 0 : index
    %c0_6 = arith.constant 0 : index
    %3 = vector.load %arg4[%c0_5, %c0_6] : memref<3x256xf32, #tpu.memory_space<vmem>>, vector<3x256xf32>
    %cst = arith.constant dense<0.000000e+00> : vector<2x256xf32>
    %4 = tpu.matmul %0, %1, %cst {dimension_numbers = #tpu.dot_dimension_numbers<[1], [0], [0], [1], [0, 0, 1, 1], [], []>} : vector<2x128xf32>, vector<128x256xf32>, vector<2x256xf32> -> vector<2x256xf32>
    %5 = vector.extract_strided_slice %3 {offsets = [0, 0], sizes = [1, 256], strides = [1, 1]} : vector<3x256xf32> to vector<1x256xf32>
    %6 = vector.broadcast %5 : vector<1x256xf32> to vector<2x256xf32>
    %7 = arith.addf %4, %6 : vector<2x256xf32>
    %cst_7 = arith.constant dense<0.000000e+00> : vector<2x256xf32>
    %8 = tpu.matmul %7, %2, %cst_7 {dimension_numbers = #tpu.dot_dimension_numbers<[1], [0], [0], [1], [0, 0, 1, 1], [], []>} : vector<2x256xf32>, vector<256x256xf32>, vector<2x256xf32> -> vector<2x256xf32>
    %9 = arith.subf %7, %8 : vector<2x256xf32>
    %10 = arith.mulf %9, %9 : vector<2x256xf32>
    %cst_8 = arith.constant dense<0.000000e+00> : vector<2x256xf32>
    %11 = tpu.matmul %10, %2, %cst_8 {dimension_numbers = #tpu.dot_dimension_numbers<[1], [0], [0], [1], [0, 0, 1, 1], [], []>} : vector<2x256xf32>, vector<256x256xf32>, vector<2x256xf32> -> vector<2x256xf32>
    %cst_9 = arith.constant 9.99999974E-6 : f32
    %12 = vector.broadcast %cst_9 : f32 to vector<2x256xf32>
    %13 = arith.addf %11, %12 : vector<2x256xf32>
    %14 = math.rsqrt %13 : vector<2x256xf32>
    %15 = arith.mulf %9, %14 : vector<2x256xf32>
    %16 = vector.extract_strided_slice %3 {offsets = [1, 0], sizes = [1, 256], strides = [1, 1]} : vector<3x256xf32> to vector<1x256xf32>
    %17 = vector.broadcast %16 : vector<1x256xf32> to vector<2x256xf32>
    %18 = arith.mulf %15, %17 : vector<2x256xf32>
    %19 = vector.extract_strided_slice %3 {offsets = [2, 0], sizes = [1, 256], strides = [1, 1]} : vector<3x256xf32> to vector<1x256xf32>
    %20 = vector.broadcast %19 : vector<1x256xf32> to vector<2x256xf32>
    %21 = arith.addf %18, %20 : vector<2x256xf32>
    %cst_10 = arith.constant 5.000000e-01 : f32
    %22 = vector.broadcast %cst_10 : f32 to vector<2x256xf32>
    %23 = arith.mulf %22, %21 : vector<2x256xf32>
    %cst_11 = arith.constant 0.707106769 : f32
    %24 = vector.broadcast %cst_11 : f32 to vector<2x256xf32>
    %25 = arith.mulf %21, %24 : vector<2x256xf32>
    %26 = math.erf %25 : vector<2x256xf32>
    %cst_12 = arith.constant 1.000000e+00 : f32
    %27 = vector.broadcast %cst_12 : f32 to vector<2x256xf32>
    %28 = arith.addf %27, %26 : vector<2x256xf32>
    %29 = arith.mulf %23, %28 : vector<2x256xf32>
    %c0_13 = arith.constant 0 : index
    %c0_14 = arith.constant 0 : index
    %30 = vector.load %arg5[%c0_13, %c0_14] : memref<2x256xf32, #tpu.memory_space<vmem>>, vector<2x256xf32>
    tpu.vector_store %arg5[%c0_13, %c0_14], %29 {strides = array<i32>} : memref<2x256xf32, #tpu.memory_space<vmem>>, vector<2x256xf32>,
    return
  }
  func.func @transform_0(%arg0: i32) -> (i32, i32) {
    %c0_i32 = arith.constant 0 : i32
    %c0_i32_0 = arith.constant 0 : i32
    return %arg0, %c0_i32 : i32, i32
  }
  func.func @transform_1(%arg0: i32) -> (i32, i32) {
    %c0_i32 = arith.constant 0 : i32
    %c0_i32_0 = arith.constant 0 : i32
    %c0_i32_1 = arith.constant 0 : i32
    return %c0_i32, %c0_i32_0 : i32, i32
  }
  func.func @transform_2(%arg0: i32) -> (i32, i32) {
    %c0_i32 = arith.constant 0 : i32
    %c0_i32_0 = arith.constant 0 : i32
    %c0_i32_1 = arith.constant 0 : i32
    return %c0_i32, %c0_i32_0 : i32, i32
  }
  func.func @transform_3(%arg0: i32) -> (i32, i32) {
    %c0_i32 = arith.constant 0 : i32
    %c0_i32_0 = arith.constant 0 : i32
    %c0_i32_1 = arith.constant 0 : i32
    return %c0_i32, %c0_i32_0 : i32, i32
  }
  func.func @transform_4(%arg0: i32) -> (i32, i32) {
    %c0_i32 = arith.constant 0 : i32
    %c0_i32_0 = arith.constant 0 : i32
    return %arg0, %c0_i32 : i32, i32
  }
}

</mosaic_0001>

<bundles_post_ra>
// kernel: tpu_custom_call.1
= control target key start
LH: loop header
LB: loop body
LE: loop exit
PB: predicated region body
PF: predicated region fallthrough
CT: control target
= control target key end

     0   :  { %9 = vsyncpa [#allocation3], 0  ;;  %s819_s0 = inlined_call_operand.hbm [shape: f32[2,128], index: 0, kind: input, shape index: {}]   ;;  %s820_s1 = inlined_call_operand.hbm [shape: f32[128,256], index: 1, kind: input, shape index: {}]   ;;  %s821_s2 = inlined_call_operand.hbm [shape: f32[256,256], index: 2, kind: input, shape index: {}]   ;;  %s822_s3 = inlined_call_operand.hbm [shape: f32[3,256], index: 3, kind: input, shape index: {}]   ;;  %s823_s4 = inlined_call_operand.hbm [shape: f32[2,256], index: 4, kind: output, shape index: {}]  }
   0x1   :  { %10 = vsyncpa [#allocation6], 0 }
   0x2   :  { %11 = vsyncpa [#allocation9], 0 }
   0x3   :  { %12 = vsyncpa [#allocation4], 0  ;;  %s611_s15 = smov [#allocation5]  }
   0x4   :  { %s28_s16 = sshll.u32 %s611_s15, 4  ;;  %s29_s16 = int_to_ptr.vmem [resolvable:$true] %s28_s16 }
   0x5   :  { %s511_s17 = scalar_lea.vmem %s29_s16, 4096  ;;  %p516_p1 = scmp.lt.s32.totalorder %s29_s16, %s29_s16 }
   0x6   :  { %p512_p0 = scmp.ne.s32.totalorder %s29_s16, %s511_s17  ;;  %p517_p2 = scmp.lt.s32.totalorder %s511_s17, %s511_s17 }
   0x8   :  { %p518_p3 = por %p517_p2, %p516_p1 }
   0xa   :  { %p519_p4 = pnand %p518_p3, %p512_p0 }
   0xc   :  { %522 = shalt.err (!%p519_p4)
}
   0xd   :  { %s612_s18 = smov 256   ;;  %s613_s19 = smov 16  }
   0xe   :  { %34 = dma.hbm_to_vmem [thread:$0]  %s820_s1, 4096, %s29_s16, [#allocation6], %s612_s18, %s612_s18, %s613_s19  }
   0xf   :  { %s614_s22 = smov [#allocation2]   ;;  %s615_s24 = smov [#allocation7]  }
  0x10   :  { %s19_s23 = sshll.u32 %s614_s22, 4  ;;  %s40_s25 = sshll.u32 %s615_s24, 4  ;;  %s20_s23 = int_to_ptr.vmem [resolvable:$true] %s19_s23  ;;  %s41_s25 = int_to_ptr.vmem [resolvable:$true] %s40_s25 }
  0x11   :  { %s531_s26 = scalar_lea.vmem %s20_s23, 32  ;;  %p536_p6 = scmp.lt.s32.totalorder %s20_s23, %s20_s23 }
  0x12   :  { %p532_p5 = scmp.ne.s32.totalorder %s20_s23, %s531_s26  ;;  %p537_p7 = scmp.lt.s32.totalorder %s531_s26, %s531_s26 }
  0x14   :  { %p538_p8 = por %p537_p7, %p536_p6 }
  0x16   :  { %p539_p9 = pnand %p538_p8, %p532_p5 }
  0x18   :  { %542 = shalt.err (!%p539_p9)
}
  0x19   :  { %22 = dma.hbm_to_vmem [thread:$0]  %s819_s0, 32, %s20_s23, [#allocation3]  }
  0x1a   :  { %s551_s29 = scalar_lea.vmem %s41_s25, 8192  ;;  %p556_p11 = scmp.lt.s32.totalorder %s41_s25, %s41_s25 }
  0x1b   :  { %p552_p10 = scmp.ne.s32.totalorder %s41_s25, %s551_s29  ;;  %p557_p12 = scmp.lt.s32.totalorder %s551_s29, %s551_s29 }
  0x1d   :  { %p558_p13 = por %p557_p12, %p556_p11 }
  0x1f   :  { %p559_p0 = pnand %p558_p13, %p552_p10 }
  0x21   :  { %562 = shalt.err (!%p559_p0)
}
  0x22   :  { %46 = dma.hbm_to_vmem [thread:$0]  %s821_s2, 8192, %s41_s25, [#allocation6], %s612_s18, %s612_s18, %s613_s19  }
  0x23   :  { %s616_s5 = smov [#allocation8]  }
  0x24   :  { %s53_s6 = sshll.u32 %s616_s5, 4  ;;  %s54_s6 = int_to_ptr.vmem [resolvable:$true] %s53_s6 }
  0x25   :  { %s571_s7 = scalar_lea.vmem %s54_s6, 128  ;;  %p576_p2 = scmp.lt.s32.totalorder %s54_s6, %s54_s6 }
  0x26   :  { %p572_p1 = scmp.ne.s32.totalorder %s54_s6, %s571_s7  ;;  %p577_p3 = scmp.lt.s32.totalorder %s571_s7, %s571_s7 }
  0x28   :  { %p578_p4 = por %p577_p3, %p576_p2 }
  0x2a   :  { %p579_p5 = pnand %p578_p4, %p572_p1 }
  0x2c   :  { %582 = shalt.err (!%p579_p5)
}
  0x2d   :  { %56 = dma.hbm_to_vmem [thread:$0]  %s822_s3, 128, %s54_s6, [#allocation9]  }
  0x2e   :  { %603 = dma.done.wait [#allocation3], 32  }
  0x2f   :  { %604 = vsyncadd [#allocation3], 4294967264 }
  0x30   :  { %605 = dma.done.wait [#allocation6], 12288  }
  0x31   :  { %606 = vsyncadd [#allocation6], 4294955008 }
  0x32   :  { %607 = dma.done.wait [#allocation9], 128  }
  0x33   :  { %608 = vsyncadd [#allocation9], 4294967168  ;;  %v617_v0 = vmov 0.0   ;;  %v101_v1 = vld [vmem:[#allocation5 + $0xf8] sm:$0xff]  ;;  %v100_v2 = vld [vmem:[#allocation5 + $0xf0] sm:$0xff]  ;;  %s618_s2 = smov [#allocation10]  }
  0x34   :  { %250 = vmatprep.mubr.f32.mxu0 %v617_v0  ;;  %v99_v3 = vld [vmem:[#allocation5 + $0xe8] sm:$0xff]  ;;  %186 = vmatprep.subr.mxu0 %v101_v1  ;;  %v98_v4 = vld [vmem:[#allocation5 + $0xe0] sm:$0xff]  ;;  %v97_v5 = vld [vmem:[#allocation5 + $0xd8] sm:$0xff]  ;;  %s475_s3 = sshll.u32 %s618_s2, 4  ;;  %s476_s3 = int_to_ptr.vmem [resolvable:$true] %s475_s3 }
  0x35   :  { %187 = vmatpush1.msra.mxu0 %v100_v2  ;;  %v96_v6 = vld [vmem:[#allocation5 + $0xd0] sm:$0xff]  ;;  %v95_v7 = vld [vmem:[#allocation5 + $0xc8] sm:$0xff]  ;;  %v94_v8 = vld [vmem:[#allocation5 + $0xc0] sm:$0xff]  ;;  %s583_s9 = scalar_lea.vmem %s476_s3, 64  ;;  %p588_p7 = scmp.lt.s32.totalorder %s476_s3, %s476_s3 }
  0x36   :  { %188 = vmatprep.subr.mxu0 %v99_v3  ;;  %v93_v9 = vld [vmem:[#allocation5 + $0xb8] sm:$0xff]  ;;  %v92_v10 = vld [vmem:[#allocation5 + $0xb0] sm:$0xff]  ;;  %v91_v11 = vld [vmem:[#allocation5 + $0xa8] sm:$0xff]  ;;  %p584_p6 = scmp.ne.s32.totalorder %s476_s3, %s583_s9  ;;  %p589_p8 = scmp.lt.s32.totalorder %s583_s9, %s583_s9 }
  0x37   :  { %189 = vmatpush1.msra.mxu0 %v98_v4  ;;  %v90_v12 = vld [vmem:[#allocation5 + $0xa0] sm:$0xff]  ;;  %v89_v13 = vld [vmem:[#allocation5 + $0x98] sm:$0xff]  ;;  %v88_v14 = vld [vmem:[#allocation5 + $0x90] sm:$0xff] }
  0x38   :  { %190 = vmatprep.subr.mxu0 %v97_v5  ;;  %v656_v15 = vld [vmem:[#allocation7 + $0xf8] sm:$0xff]  ;;  %v658_v16 = vld [vmem:[#allocation7 + $0xf0] sm:$0xff]  ;;  %v660_v17 = vld [vmem:[#allocation7 + $0xe8] sm:$0xff]  ;;  %p590_p9 = por %p589_p8, %p588_p7 }
  0x39   :  { %191 = vmatpush1.msra.mxu0 %v96_v6  ;;  %v87_v18 = vld [vmem:[#allocation5 + $0x88] sm:$0xff]  ;;  %257 = vmatprep.subr.mxu1 %v656_v15  ;;  %v663_v19 = vld [vmem:[#allocation7 + $0xe0] sm:$0xff]  ;;  %v666_v21 = vld [vmem:[#allocation7 + $0xd8] sm:$0xff] }
  0x3a   :  { %192 = vmatprep.subr.mxu0 %v95_v7  ;;  %v86_v20 = vld [vmem:[#allocation5 + $0x80] sm:$0xff]  ;;  %258 = vmatpush1.msra.mxu1 %v658_v16  ;;  %v85_v22 = vld [vmem:[#allocation5 + $0x78] sm:$0xff]  ;;  %v669_v23 = vld [vmem:[#allocation7 + $0xd0] sm:$0xff]  ;;  %p591_p10 = pnand %p590_p9, %p584_p6 }
  0x3b   :  { %193 = vmatpush1.msra.mxu0 %v94_v8  ;;  %259 = vmatprep.subr.mxu1 %v660_v17  ;;  %v84_v24 = vld [vmem:[#allocation5 + $0x70] sm:$0xff]  ;;  %v672_v25 = vld [vmem:[#allocation7 + $0xc8] sm:$0xff]  ;;  %v675_v27 = vld [vmem:[#allocation7 + $0xc0] sm:$0xff] }
  0x3c   :  { %194 = vmatprep.subr.mxu0 %v93_v9  ;;  %260 = vmatpush1.msra.mxu1 %v663_v19  ;;  %v83_v26 = vld [vmem:[#allocation5 + $0x68] sm:$0xff]  ;;  %v82_v28 = vld [vmem:[#allocation5 + $0x60] sm:$0xff]  ;;  %v678_v29 = vld [vmem:[#allocation7 + $0xb8] sm:$0xff] }
  0x3d   :  { %195 = vmatpush1.msra.mxu0 %v92_v10  ;;  %261 = vmatprep.subr.mxu1 %v666_v21  ;;  %v81_v30 = vld [vmem:[#allocation5 + $0x58] sm:$0xff]  ;;  %v681_v31 = vld [vmem:[#allocation7 + $0xb0] sm:$0xff]  ;;  %v684_v33 = vld [vmem:[#allocation7 + $0xa8] sm:$0xff] }
  0x3e   :  { %196 = vmatprep.subr.mxu0 %v91_v11  ;;  %262 = vmatpush1.msra.mxu1 %v669_v23  ;;  %v80_v32 = vld [vmem:[#allocation5 + $0x50] sm:$0xff]  ;;  %v79_v34 = vld [vmem:[#allocation5 + $0x48] sm:$0xff]  ;;  %v687_v35 = vld [vmem:[#allocation7 + $0xa0] sm:$0xff] }
  0x3f   :  { %197 = vmatpush1.msra.mxu0 %v90_v12  ;;  %263 = vmatprep.subr.mxu1 %v672_v25  ;;  %v78_v36 = vld [vmem:[#allocation5 + $0x40] sm:$0xff]  ;;  %v690_v37 = vld [vmem:[#allocation7 + $0x98] sm:$0xff]  ;;  %v693_v39 = vld [vmem:[#allocation7 + $0x90] sm:$0xff] }
  0x40   :  { %198 = vmatprep.subr.mxu0 %v89_v13  ;;  %264 = vmatpush1.msra.mxu1 %v675_v27  ;;  %v77_v38 = vld [vmem:[#allocation5 + $0x38] sm:$0xff]  ;;  %v76_v40 = vld [vmem:[#allocation5 + $0x30] sm:$0xff]  ;;  %v696_v41 = vld [vmem:[#allocation7 + $0x88] sm:$0xff] }
  0x41   :  { %199 = vmatpush1.msra.mxu0 %v88_v14  ;;  %265 = vmatprep.subr.mxu1 %v678_v29  ;;  %v75_v42 = vld [vmem:[#allocation5 + $0x28] sm:$0xff]  ;;  %v699_v43 = vld [vmem:[#allocation7 + $0x80] sm:$0xff]  ;;  %v702_v45 = vld [vmem:[#allocation7 + $0x78] sm:$0xff] }
  0x42   :  { %200 = vmatprep.subr.mxu0 %v87_v18  ;;  %266 = vmatpush1.msra.mxu1 %v681_v31  ;;  %v74_v44 = vld [vmem:[#allocation5 + $0x20] sm:$0xff]  ;;  %v73_v46 = vld [vmem:[#allocation5 + $0x18] sm:$0xff]  ;;  %v705_v47 = vld [vmem:[#allocation7 + $0x70] sm:$0xff] }
  0x43   :  { %201 = vmatpush1.msra.mxu0 %v86_v20  ;;  %267 = vmatprep.subr.mxu1 %v684_v33  ;;  %v72_v48 = vld [vmem:[#allocation5 + $0x10] sm:$0xff]  ;;  %v708_v49 = vld [vmem:[#allocation7 + $0x68] sm:$0xff]  ;;  %v711_v51 = vld [vmem:[#allocation7 + $0x60] sm:$0xff] }
  0x44   :  { %202 = vmatprep.subr.mxu0 %v85_v22  ;;  %268 = vmatpush1.msra.mxu1 %v687_v35  ;;  %v71_v50 = vld [vmem:[#allocation5 + $0x8] sm:$0xff]  ;;  %v70_v52 = vld [vmem:[#allocation5] sm:$0xff]  ;;  %v714_v53 = vld [vmem:[#allocation7 + $0x58] sm:$0xff] }
  0x45   :  { %203 = vmatpush1.msra.mxu0 %v84_v24  ;;  %269 = vmatprep.subr.mxu1 %v690_v37  ;;  %v69_v54 = vld [vmem:[#allocation2] sm:$0x3]  ;;  %v717_v55 = vld [vmem:[#allocation7 + $0x50] sm:$0xff]  ;;  %v720_v56 = vld [vmem:[#allocation7 + $0x48] sm:$0xff] }
  0x46   :  { %204 = vmatprep.subr.mxu0 %v83_v26  ;;  %270 = vmatpush1.msra.mxu1 %v693_v39  ;;  %v723_v57 = vld [vmem:[#allocation7 + $0x40] sm:$0xff]  ;;  %v726_v58 = vld [vmem:[#allocation7 + $0x38] sm:$0xff]  ;;  %v729_v59 = vld [vmem:[#allocation7 + $0x30] sm:$0xff] }
  0x47   :  { %205 = vmatpush1.msra.mxu0 %v82_v28  ;;  %271 = vmatprep.subr.mxu1 %v696_v41  ;;  %v733_v60 = vld [vmem:[#allocation7 + $0x28] sm:$0xff]  ;;  %v737_v61 = vld [vmem:[#allocation7 + $0x20] sm:$0xff]  ;;  %v741_v62 = vld [vmem:[#allocation7 + $0x18] sm:$0xff] }
  0x48   :  { %206 = vmatprep.subr.mxu0 %v81_v30  ;;  %272 = vmatpush1.msra.mxu1 %v699_v43  ;;  %v745_v63 = vld [vmem:[#allocation7 + $0x10] sm:$0xff]  ;;  %v749_v0 = vld [vmem:[#allocation7 + $0x8] sm:$0xff]  ;;  %v753_v1 = vld [vmem:[#allocation7] sm:$0xff] }
  0x49   :  { %207 = vmatpush1.msra.mxu0 %v80_v32  ;;  %273 = vmatprep.subr.mxu1 %v702_v45  ;;  %v757_v2 = vld [vmem:[#allocation7 + $0x1f8] sm:$0xff]  ;;  %v761_v3 = vld [vmem:[#allocation7 + $0x1f0] sm:$0xff]  ;;  %v765_v4 = vld [vmem:[#allocation7 + $0x1e8] sm:$0xff] }
  0x4a   :  { %208 = vmatprep.subr.mxu0 %v79_v34  ;;  %274 = vmatpush1.msra.mxu1 %v705_v47  ;;  %v769_v5 = vld [vmem:[#allocation7 + $0x1e0] sm:$0xff]  ;;  %v773_v6 = vld [vmem:[#allocation7 + $0x1d8] sm:$0xff]  ;;  %v777_v7 = vld [vmem:[#allocation7 + $0x1d0] sm:$0xff]  ;;  %v168_v34 = vlaneseq }
  0x4b   :  { %209 = vmatpush1.msra.mxu0 %v78_v36  ;;  %275 = vmatprep.subr.mxu1 %v708_v49  ;;  %v781_v8 = vld [vmem:[#allocation7 + $0x1c8] sm:$0xff]  ;;  %v785_v9 = vld [vmem:[#allocation7 + $0x1c0] sm:$0xff]  ;;  %v157_v10 = vld [vmem:[#allocation7 + $0x1b8] sm:$0xff] }
  0x4c   :  { %210 = vmatprep.subr.mxu0 %v77_v38  ;;  %276 = vmatpush1.msra.mxu1 %v711_v51  ;;  %v156_v11 = vld [vmem:[#allocation7 + $0x1b0] sm:$0xff]  ;;  %v155_v12 = vld [vmem:[#allocation7 + $0x1a8] sm:$0xff]  ;;  %v154_v13 = vld [vmem:[#allocation7 + $0x1a0] sm:$0xff] }
  0x4d   :  { %211 = vmatpush1.msra.mxu0 %v76_v40  ;;  %277 = vmatprep.subr.mxu1 %v714_v53  ;;  %v153_v14 = vld [vmem:[#allocation7 + $0x198] sm:$0xff]  ;;  %v147_v20 = vld [vmem:[#allocation7 + $0x168] sm:$0xff]  ;;  %v166_v38 = vld [vmem:[#allocation8] sm:$0x77] }
  0x4e   :  { %212 = vmatprep.subr.mxu0 %v75_v42  ;;  %278 = vmatpush1.msra.mxu1 %v717_v55  ;;  %v149_v18 = vld [vmem:[#allocation7 + $0x178] sm:$0xff]  ;;  %v143_v24 = vld [vmem:[#allocation7 + $0x148] sm:$0xff] }
  0x4f   :  { %213 = vmatpush1.msra.mxu0 %v74_v44  ;;  %279 = vmatprep.subr.mxu1 %v720_v56  ;;  %v145_v22 = vld [vmem:[#allocation7 + $0x158] sm:$0xff]  ;;  %v139_v28 = vld [vmem:[#allocation7 + $0x128] sm:$0xff] }
  0x50   :  { %214 = vmatprep.subr.mxu0 %v73_v46  ;;  %280 = vmatpush1.msra.mxu1 %v723_v57  ;;  %v141_v26 = vld [vmem:[#allocation7 + $0x138] sm:$0xff]  ;;  %v135_v32 = vld [vmem:[#allocation7 + $0x108] sm:$0xff] }
  0x51   :  { %215 = vmatpush1.msra.mxu0 %v72_v48  ;;  %281 = vmatprep.subr.mxu1 %v726_v58  ;;  %v137_v30 = vld [vmem:[#allocation7 + $0x118] sm:$0xff] }
  0x52   :  { %216 = vmatprep.subr.mxu0 %v71_v50  ;;  %282 = vmatpush1.msra.mxu1 %v729_v59 }
  0x53   :  { %217 = vmatpush1.msra.mxu0 %v70_v52  ;;  %283 = vmatprep.subr.mxu1 %v733_v60 }
  0x54   :  { %251 = vmatmul.mubr.f32.vlgmr.msra.gmra.mxu0 %v69_v54  ;;  %332 = vmatprep.subr.mxu0 %v656_v15  ;;  %v152_v15 = vld [vmem:[#allocation7 + $0x190] sm:$0xff] }
  0x55   :  { %333 = vmatpush1.msra.mxu0 %v658_v16  ;;  %284 = vmatpush1.msra.mxu1 %v737_v61  ;;  %v151_v16 = vld [vmem:[#allocation7 + $0x188] sm:$0xff] }
  0x56   :  { %334 = vmatprep.subr.mxu0 %v660_v17  ;;  %285 = vmatprep.subr.mxu1 %v741_v62  ;;  %v150_v17 = vld [vmem:[#allocation7 + $0x180] sm:$0xff] }
  0x57   :  { %335 = vmatpush1.msra.mxu0 %v663_v19  ;;  %286 = vmatpush1.msra.mxu1 %v745_v63  ;;  %v148_v19 = vld [vmem:[#allocation7 + $0x170] sm:$0xff] }
  0x58   :  { %336 = vmatprep.subr.mxu0 %v666_v21  ;;  %287 = vmatprep.subr.mxu1 %v749_v0  ;;  %v146_v21 = vld [vmem:[#allocation7 + $0x160] sm:$0xff] }
  0x59   :  { %337 = vmatpush1.msra.mxu0 %v669_v23  ;;  %288 = vmatpush1.msra.mxu1 %v753_v1  ;;  %v144_v23 = vld [vmem:[#allocation7 + $0x150] sm:$0xff] }
  0x5a   :  { %338 = vmatprep.subr.mxu0 %v672_v25  ;;  %289 = vmatprep.subr.mxu1 %v757_v2  ;;  %v142_v25 = vld [vmem:[#allocation7 + $0x140] sm:$0xff] }
  0x5b   :  { %339 = vmatpush1.msra.mxu0 %v675_v27  ;;  %290 = vmatpush2.msra.mxu1 %v761_v3  ;;  %v140_v27 = vld [vmem:[#allocation7 + $0x130] sm:$0xff] }
  0x5c   :  { %340 = vmatprep.subr.mxu0 %v678_v29  ;;  %291 = vmatprep.subr.mxu1 %v765_v4  ;;  %v138_v29 = vld [vmem:[#allocation7 + $0x120] sm:$0xff] }
  0x5d   :  { %341 = vmatpush1.msra.mxu0 %v681_v31  ;;  %292 = vmatpush2.msra.mxu1 %v769_v5  ;;  %v136_v31 = vld [vmem:[#allocation7 + $0x110] sm:$0xff] }
  0x5e   :  { %342 = vmatprep.subr.mxu0 %v684_v33  ;;  %293 = vmatprep.subr.mxu1 %v773_v6  ;;  %v134_v33 = vld [vmem:[#allocation7 + $0x100] sm:$0xff] }
  0x5f   :  { %343 = vmatpush1.msra.mxu0 %v687_v35  ;;  %294 = vmatpush2.msra.mxu1 %v777_v7  ;;  %v169_v35 = vshrl.u32 %v168_v34, 7 }
  0x60   :  { %344 = vmatprep.subr.mxu0 %v690_v37  ;;  %295 = vmatprep.subr.mxu1 %v781_v8 }
  0x61   :  { %345 = vmatpush1.msra.mxu0 %v693_v39  ;;  %296 = vmatpush2.msra.mxu1 %v785_v9  ;;  %v174_v36 = vsub.s32 4, %v169_v35  ;;  %v170_v37 = vsub.s32 0, %v169_v35 }
  0x62   :  { %346 = vmatprep.subr.mxu0 %v696_v41  ;;  %297 = vmatprep.subr.mxu1 %v157_v10 }
  0x63   :  { %347 = vmatpush1.msra.mxu0 %v699_v43  ;;  %298 = vmatpush2.msra.mxu1 %v156_v11  ;;  %v175_v39 = vrot.slane %v166_v38, %v174_v36  ;;  %v171_v40 = vrot.slane %v166_v38, %v170_v37 }
  0x64   :  { %348 = vmatprep.subr.mxu0 %v702_v45  ;;  %299 = vmatprep.subr.mxu1 %v155_v12 }
  0x65   :  { %349 = vmatpush1.msra.mxu0 %v705_v47  ;;  %300 = vmatpush2.msra.mxu1 %v154_v13  ;;  %v185_v41 = vrot.slane %v175_v39, %v170_v37  ;;  %v181_v42 = vrot.slane %v171_v40, %v170_v37 }
  0x66   :  { %350 = vmatprep.subr.mxu0 %v708_v49  ;;  %301 = vmatprep.subr.mxu1 %v153_v14 }
  0x67   :  { %351 = vmatpush1.msra.mxu0 %v711_v51  ;;  %302 = vmatpush2.msra.mxu1 %v152_v15 }
  0x68   :  { %352 = vmatprep.subr.mxu0 %v714_v53  ;;  %303 = vmatprep.subr.mxu1 %v151_v16 }
  0x69   :  { %353 = vmatpush1.msra.mxu0 %v717_v55  ;;  %304 = vmatpush2.msra.mxu1 %v150_v17 }
  0x6a   :  { %354 = vmatprep.subr.mxu0 %v720_v56  ;;  %305 = vmatprep.subr.mxu1 %v149_v18 }
  0x6b   :  { %355 = vmatpush1.msra.mxu0 %v723_v57  ;;  %306 = vmatpush2.msra.mxu1 %v148_v19  ;;  %v409_v57 = vsub.s32 1, %v169_v35 }
  0x6c   :  { %356 = vmatprep.subr.mxu0 %v726_v58  ;;  %307 = vmatprep.subr.mxu1 %v147_v20  ;;  %v413_v58 = vsub.s32 5, %v169_v35 }
  0x6d   :  { %357 = vmatpush1.msra.mxu0 %v729_v59  ;;  %308 = vmatpush2.msra.mxu1 %v146_v21  ;;  %v429_v59 = vsub.s32 2, %v169_v35 }
  0x6e   :  { %358 = vmatprep.subr.mxu0 %v733_v60  ;;  %309 = vmatprep.subr.mxu1 %v145_v22  ;;  %v410_v60 = vrot.slane %v166_v38, %v409_v57 }
  0x6f   :  { %359 = vmatpush1.msra.mxu0 %v737_v61  ;;  %310 = vmatpush2.msra.mxu1 %v144_v23  ;;  %v433_v61 = vsub.s32 6, %v169_v35 }
  0x70   :  { %360 = vmatprep.subr.mxu0 %v741_v62  ;;  %311 = vmatprep.subr.mxu1 %v143_v24  ;;  %v414_v62 = vrot.slane %v166_v38, %v413_v58 }
  0x71   :  { %361 = vmatpush1.msra.mxu0 %v745_v63  ;;  %312 = vmatpush2.msra.mxu1 %v142_v25  ;;  %v430_v63 = vrot.slane %v166_v38, %v429_v59 }
  0x72   :  { %362 = vmatprep.subr.mxu0 %v749_v0  ;;  %313 = vmatprep.subr.mxu1 %v141_v26  ;;  %v420_v0 = vrot.slane %v410_v60, %v409_v57 }
  0x73   :  { %363 = vmatpush1.msra.mxu0 %v753_v1  ;;  %314 = vmatpush2.msra.mxu1 %v140_v27  ;;  %v434_v1 = vrot.slane %v166_v38, %v433_v61 }
  0x74   :  { %364 = vmatprep.subr.mxu0 %v757_v2  ;;  %315 = vmatprep.subr.mxu1 %v139_v28 }
  0x75   :  { %365 = vmatpush2.msra.mxu0 %v761_v3  ;;  %316 = vmatpush2.msra.mxu1 %v138_v29 }
  0x76   :  { %366 = vmatprep.subr.mxu0 %v765_v4  ;;  %317 = vmatprep.subr.mxu1 %v137_v30  ;;  %v424_v4 = vrot.slane %v414_v62, %v409_v57 }
  0x77   :  { %367 = vmatpush2.msra.mxu0 %v769_v5  ;;  %318 = vmatpush2.msra.mxu1 %v136_v31  ;;  %v440_v5 = vrot.slane %v430_v63, %v429_v59 }
  0x78   :  { %368 = vmatprep.subr.mxu0 %v773_v6  ;;  %319 = vmatprep.subr.mxu1 %v135_v32 }
  0x79   :  { %369 = vmatpush2.msra.mxu0 %v777_v7  ;;  %320 = vmatpush2.msra.mxu1 %v134_v33 }
  0x7a   :  { %370 = vmatprep.subr.mxu0 %v781_v8 }
  0x7b   :  { %371 = vmatpush2.msra.mxu0 %v785_v9  ;;  %v444_v9 = vrot.slane %v434_v1, %v429_v59 }
  0x7c   :  { %372 = vmatprep.subr.mxu0 %v157_v10 }
  0x7d   :  { %373 = vmatpush2.msra.mxu0 %v156_v11 }
  0x7e   :  { %374 = vmatprep.subr.mxu0 %v155_v12 }
  0x7f   :  { %375 = vmatpush2.msra.mxu0 %v154_v13 }
  0x80   :  { %376 = vmatprep.subr.mxu0 %v153_v14 }
  0x81   :  { %377 = vmatpush2.msra.mxu0 %v152_v15 }
  0x82   :  { %378 = vmatprep.subr.mxu0 %v151_v16 }
  0x83   :  { %379 = vmatpush2.msra.mxu0 %v150_v17 }
  0x84   :  { %380 = vmatprep.subr.mxu0 %v149_v18 }
  0x85   :  { %381 = vmatpush2.msra.mxu0 %v148_v19 }
  0x86   :  { %382 = vmatprep.subr.mxu0 %v147_v20 }
  0x87   :  { %383 = vmatpush2.msra.mxu0 %v146_v21 }
  0x88   :  { %384 = vmatprep.subr.mxu0 %v145_v22 }
  0x89   :  { %385 = vmatpush2.msra.mxu0 %v144_v23 }
  0x8a   :  { %386 = vmatprep.subr.mxu0 %v143_v24 }
  0x8b   :  { %387 = vmatpush2.msra.mxu0 %v142_v25 }
  0x8c   :  { %388 = vmatprep.subr.mxu0 %v141_v26 }
  0x8d   :  { %389 = vmatpush2.msra.mxu0 %v140_v27 }
  0x8e   :  { %390 = vmatprep.subr.mxu0 %v139_v28 }
  0x8f   :  { %391 = vmatpush2.msra.mxu0 %v138_v29 }
  0x90   :  { %392 = vmatprep.subr.mxu0 %v137_v30 }
  0x91   :  { %393 = vmatpush2.msra.mxu0 %v136_v31 }
  0x92   :  { %394 = vmatprep.subr.mxu0 %v135_v32 }
  0x93   :  { %395 = vmatpush2.msra.mxu0 %v134_v33 }
 0x114   :  { %v252_v43 = vpop.f32.mrf.mxu0 }
 0x115   :  { %v253_v46 = vadd.f32 %v252_v43, %v181_v42 }
 0x116   :  { %v254_v44 = vpop.f32.mrf.mxu0 }
 0x117   :  { %v255_v45 = vadd.f32 %v254_v44, %v185_v41 }
 0x119   :  { %321 = vmatprep.mubr.f32.mxu1 %v255_v45 }
 0x11a   :  { %322 = vmatmul.mubr.f32.vlgmr.msra.gmra.mxu1 %v253_v46 }
 0x1da   :  { %v323_v47 = vpop.f32.mrf.mxu1 }
 0x1db   :  { %v328_v48 = vsub.f32 %v253_v46, %v323_v47 }
 0x1dc   :  { %v325_v49 = vpop.f32.mrf.mxu1 }
 0x1dd   :  { %v329_v50 = vsub.f32 %v255_v45, %v325_v49  ;;  %v330_v52 = vmul.f32 %v328_v48, %v328_v48 }
 0x1df   :  { %v331_v51 = vmul.f32 %v329_v50, %v329_v50 }
 0x1e1   :  { %396 = vmatprep.mubr.f32.mxu0 %v331_v51 }
 0x1e2   :  { %397 = vmatmul.mubr.f32.vlgmr.msra.gmra.mxu0 %v330_v52 }
 0x2a2   :  { %v398_v53 = vpop.f32.mrf.mxu0 }
 0x2a3   :  { %v399_v54 = vadd.f32 1e-05, %v398_v53 }
 0x2a4   :  { %v400_v55 = vpop.f32.mrf.mxu0 }
 0x2a5   :  { %495 = vrsqrt.f32 %v399_v54  ;;  %v401_v56 = vadd.f32 1e-05, %v400_v55 }
 0x2a7   :  { %497 = vrsqrt.f32 %v401_v56 }
 0x2b2   :  { %v496_v2 = vpop.eup %495 }
 0x2b3   :  { %v405_v3 = vmul.f32 %v496_v2, %v328_v48 }
 0x2b4   :  { %v498_v6 = vpop.eup %497 }
 0x2b5   :  { %v406_v7 = vmul.f32 %v498_v6, %v329_v50  ;;  %v425_v8 = vmul.f32 %v420_v0, %v405_v3 }
 0x2b7   :  { %v426_v10 = vmul.f32 %v424_v4, %v406_v7  ;;  %v445_v11 = vadd.f32 %v440_v5, %v425_v8 }
 0x2b9   :  { %v446_v12 = vadd.f32 %v444_v9, %v426_v10  ;;  %v449_v13 = vmul.f32 0.70710677, %v445_v11  ;;  %v447_v18 = vmul.f32 0.5, %v445_v11 }
 0x2bb   :  { %v450_v14 = vmul.f32 0.70710677, %v446_v12  ;;  %499 = verf.f32 %v449_v13  ;;  %v448_v19 = vmul.f32 0.5, %v446_v12 }
 0x2bd   :  { %501 = verf.f32 %v450_v14 }
 0x2c8   :  { %v500_v15 = vpop.eup %499 }
 0x2c9   :  { %v453_v16 = vadd.f32 1.0, %v500_v15 }
 0x2ca   :  { %v502_v17 = vpop.eup %501 }
 0x2cb   :  { %v454_v20 = vadd.f32 1.0, %v502_v17  ;;  %v455_v21 = vmul.f32 %v453_v16, %v447_v18 }
 0x2cd   :  { %v456_v22 = vmul.f32 %v454_v20, %v448_v19 }
 0x2cf   :  { %v459_v23 = vcombine.low %v455_v21, %v456_v22 }
 0x2d1   :  { %486 = vst.sshfl [vmem:[#allocation10] sm:$0x33 pattern:$0x76325410] %v459_v23 }
 0x2d2   :  { %594 = shalt.err (!%p591_p10)
}
 0x2d3   :  { %478 = dma.vmem_to_hbm [thread:$0]  %s476_s3, 64, %s823_s4, [#allocation4]  }
 0x2d4   :  { %609 = dma.done.wait [#allocation4], 64  }
 0x2d5   :  { %610 = vsyncadd [#allocation4], 4294967232 }
 0x2d6   :  { %482 = vsyncpa [#allocation3], 1 }
 0x2d7   :  { %483 = vsyncpa [#allocation6], 1 }
 0x2d8   :  { %484 = vsyncpa [#allocation9], 1 }
 0x2d9   :  { %485 = vsyncpa [#allocation4], 1 }

</bundles_post_ra>
